<compile_context>
chip_gen: v7x
topology: tpu7x:2x2x1
jax: 0.10.0
libtpu: 0.0.40
codegen_flags: <defaults>
</compile_context>

<pallas_src>
import jax
import jax.numpy as jnp
from jax.experimental import pallas as pl
from jax.experimental.pallas import tpu as pltpu

LANE = 128      # last-dim (lane) tiling granularity
SUBLANE = 16    # second-to-last (sublane) granularity; 16 covers bf16 packing


def _round_up(x, m):
    return (x + m - 1) // m * m


def _vmem_ceiling_bytes():
    """Generation-aware VMEM ceiling with headroom for compiler scratch."""
    try:
        cap = int(pltpu.get_tpu_info().vmem_capacity_bytes)
    except Exception:
        cap = 64 << 20                      # conservative fallback (v7x-sized)
    return max(cap - (12 << 20), 32 << 20)  # ~52 MiB on v7x, ~112 MiB on v5e/v6e


def linear_ae_kernel(x_ref,
                     w1_ref, b1_ref,   # enc1: (F, H) bf16, (1, H) f32
                     w2_ref, b2_ref,   # enc2: (H, L) bf16, (1, L) f32
                     w3_ref, b3_ref,   # dec1: (L, H) bf16, (1, H) f32
                     w4_ref, b4_ref,   # dec2: (H, F) bf16, (1, F) f32
                     r_ref, z_ref):
    x = x_ref[...]                                    # (TB, F) bf16

    # ---- encode ----
    h = jnp.dot(x, w1_ref[...], preferred_element_type=jnp.float32) + b1_ref[...]
    h = jnp.maximum(h, 0.0)                           # ReLU in f32 (VPU)
    # dropout -> identity (eval mode)
    z = jnp.dot(h.astype(jnp.bfloat16), w2_ref[...],
                preferred_element_type=jnp.float32) + b2_ref[...]

    # ---- decode ----
    g = jnp.dot(z.astype(jnp.bfloat16), w3_ref[...],
                preferred_element_type=jnp.float32) + b3_ref[...]
    g = jnp.maximum(g, 0.0)                           # ReLU in f32 (VPU)
    # dropout -> identity (eval mode)
    r = jnp.dot(g.astype(jnp.bfloat16), w4_ref[...],
                preferred_element_type=jnp.float32) + b4_ref[...]

    r_ref[...] = r.astype(r_ref.dtype)
    z_ref[...] = z.astype(z_ref.dtype)


def prepare_params(raw):
    """One-time prep: zero-pad feature dims to lane multiples and cast weights
    to bf16. Do this at init so every forward skips the HBM pad/convert pass."""
    F, H = raw["w1"].shape
    L = raw["w2"].shape[1]
    F_pad, H_pad, L_pad = (_round_up(d, LANE) for d in (F, H, L))

    def pad_w(w, ip, op):
        out = jnp.zeros((ip, op), jnp.bfloat16)
        return out.at[:w.shape[0], :w.shape[1]].set(w.astype(jnp.bfloat16))

    def pad_b(b, op):
        out = jnp.zeros((1, op), jnp.float32)
        return out.at[:, :b.shape[1]].set(b.astype(jnp.float32))

    return dict(
        w1=pad_w(raw["w1"], F_pad, H_pad), b1=pad_b(raw["b1"], H_pad),
        w2=pad_w(raw["w2"], H_pad, L_pad), b2=pad_b(raw["b2"], L_pad),
        w3=pad_w(raw["w3"], L_pad, H_pad), b3=pad_b(raw["b3"], H_pad),
        w4=pad_w(raw["w4"], H_pad, F_pad), b4=pad_b(raw["b4"], F_pad),
        dims=(F, H, L),
    )


def linear_ae_forward(x, prepped, *, max_batch_tile=1024, out_dtype=jnp.float32):
    """Full AE forward pass: batch-tiled grid, weights resident in VMEM.

    `prepped` must come from prepare_params(). out_dtype may be jnp.bfloat16 to
    halve R/z writeback bytes (recommended on v5e)."""
    F, H, L = prepped["dims"]
    B, Fx = x.shape
    assert Fx == F, f"expected x[:, {F}], got {x.shape}"
    F_pad, H_pad = prepped["w1"].shape
    L_pad = prepped["w2"].shape[1]

    # ---- batch tiling: sublane-granular, >= 2 tiles when the batch is big ----
    B_pad0 = _round_up(B, SUBLANE)
    TB = min(_round_up(max_batch_tile, SUBLANE), B_pad0)
    if B_pad0 >= 2 * LANE:                      # shard batch over both v7x TCs
        TB = min(TB, _round_up((B_pad0 + 1) // 2, SUBLANE))
    B_pad = _round_up(B_pad0, TB)
    n_tiles = B_pad // TB

    # ---- input: only pad/copy when actually needed ----
    if x.dtype == jnp.bfloat16 and B == B_pad and F == F_pad:
        x_p = x
    else:
        x_p = jnp.zeros((B_pad, F_pad), jnp.bfloat16).at[:B, :F].set(
            x.astype(jnp.bfloat16))

    # ---- BlockSpecs ----
    x_spec = pl.BlockSpec((TB, F_pad), lambda i: (i, 0))
    r_spec = pl.BlockSpec((TB, F_pad), lambda i: (i, 0))
    z_spec = pl.BlockSpec((TB, L_pad), lambda i: (i, 0))

    def resident(shape):
        # Constant index_map => same block every step; single buffer is enough.
        return pl.BlockSpec(shape, lambda i: (0, 0), pipeline_mode=pl.Buffered(1))

    # ---- VMEM budget (weights counted once) + cost estimate ----
    out_itemsize = jnp.dtype(out_dtype).itemsize
    weight_bytes = 2 * (F_pad * H_pad + H_pad * L_pad + L_pad * H_pad + H_pad * F_pad)
    bias_bytes = 4 * (2 * H_pad + L_pad + F_pad)
    tile_bytes = TB * (F_pad * 2 + F_pad * out_itemsize + L_pad * out_itemsize)
    needed = weight_bytes + bias_bytes + 2 * tile_bytes + (4 << 20)   # +headroom
    vmem_limit = int(min(max(needed, 16 << 20), _vmem_ceiling_bytes()))

    flops = 2 * B_pad * (F_pad * H_pad + H_pad * L_pad + L_pad * H_pad + H_pad * F_pad)
    bytes_accessed = (weight_bytes + bias_bytes
                      + B_pad * F_pad * 2                      # x (bf16)
                      + B_pad * F_pad * out_itemsize           # R
                      + B_pad * L_pad * out_itemsize)          # z
    cost = pl.CostEstimate(flops=flops, transcendentals=0,
                           bytes_accessed=bytes_accessed)

    R_pad, z_pad = pl.pallas_call(
        linear_ae_kernel,
        out_shape=(
            jax.ShapeDtypeStruct((B_pad, F_pad), out_dtype),   # R (reconstruction)
            jax.ShapeDtypeStruct((B_pad, L_pad), out_dtype),   # z (latent)
        ),
        grid=(n_tiles,),
        in_specs=[
            x_spec,
            resident((F_pad, H_pad)), resident((1, H_pad)),
            resident((H_pad, L_pad)), resident((1, L_pad)),
            resident((L_pad, H_pad)), resident((1, H_pad)),
            resident((H_pad, F_pad)), resident((1, F_pad)),
        ],
        out_specs=(r_spec, z_spec),
        compiler_params=pltpu.CompilerParams(
            dimension_semantics=("parallel",),
            vmem_limit_bytes=vmem_limit,
        ),
        cost_estimate=cost,
    )(x_p, prepped["w1"], prepped["b1"], prepped["w2"], prepped["b2"],
      prepped["w3"], prepped["b3"], prepped["w4"], prepped["b4"])

    return R_pad[:B, :F], z_pad[:B, :L]


def init_params(key, feature_size, hidden_size, latent_size):
    """Deterministic init mimicking nn.Linear default (uniform(-1/sqrt(fan_in), ...)).
    Weights are stored as (in_features, out_features)."""
    def linear_init(k, fan_in, fan_out):
        kw, kb = jax.random.split(k)
        bound = 1.0 / jnp.sqrt(fan_in)
        w = jax.random.uniform(kw, (fan_in, fan_out), jnp.float32, -bound, bound)
        b = jax.random.uniform(kb, (1, fan_out), jnp.float32, -bound, bound)
        return w, b

    k1, k2, k3, k4 = jax.random.split(key, 4)
    w1, b1 = linear_init(k1, feature_size, hidden_size)   # enc1
    w2, b2 = linear_init(k2, hidden_size, latent_size)    # enc2
    w3, b3 = linear_init(k3, latent_size, hidden_size)    # dec1
    w4, b4 = linear_init(k4, hidden_size, feature_size)   # dec2
    return dict(w1=w1, b1=b1, w2=w2, b2=b2, w3=w3, b3=b3, w4=w4, b4=b4)


def reference_forward_bf16(x, p):
    """Pure-JAX reference mirroring the kernel's bf16 MXU operands / f32 accum."""
    bf = jnp.bfloat16
    h = jnp.maximum(jnp.dot(x.astype(bf), p["w1"].astype(bf),
                            preferred_element_type=jnp.float32) + p["b1"], 0.0)
    z = jnp.dot(h.astype(bf), p["w2"].astype(bf),
                preferred_element_type=jnp.float32) + p["b2"]
    g = jnp.maximum(jnp.dot(z.astype(bf), p["w3"].astype(bf),
                            preferred_element_type=jnp.float32) + p["b3"], 0.0)
    R = jnp.dot(g.astype(bf), p["w4"].astype(bf),
                preferred_element_type=jnp.float32) + p["b4"]
    return R, z


def reference_forward_f32(x, p):
    """Pure-JAX full-f32 reference (module semantics, eval-mode dropout)."""
    h = jnp.maximum(x @ p["w1"] + p["b1"], 0.0)
    z = h @ p["w2"] + p["b2"]
    g = jnp.maximum(z @ p["w3"] + p["b3"], 0.0)
    R = g @ p["w4"] + p["b4"]
    return R, z


if __name__ == "__main__":
    # Small shapes consistent with the module's forward: x is (batch, feature_size).
    batch, feature_size, hidden_size, latent_size = 8, 64, 32, 16

    key = jax.random.PRNGKey(0)
    k_params, k_x = jax.random.split(key)

    params = init_params(k_params, feature_size, hidden_size, latent_size)
    prepped = prepare_params(params)            # one-time pad/cast of weights
    x = jax.random.normal(k_x, (batch, feature_size), jnp.float32)

    # f32 outputs: verify against references.
    R, z = linear_ae_forward(x, prepped)
    R = jax.block_until_ready(R)
    z = jax.block_until_ready(z)

    assert R.shape == (batch, feature_size)
    assert z.shape == (batch, latent_size)

    # Exact-semantics check against a reference with identical bf16 casts.
    R_ref, z_ref = reference_forward_bf16(x, params)
    assert jnp.allclose(R, R_ref, atol=2e-3, rtol=2e-3)
    assert jnp.allclose(z, z_ref, atol=2e-3, rtol=2e-3)

    # Loose check against the full-f32 module semantics (bf16 operand rounding only).
    R32, z32 = reference_forward_f32(x, params)
    assert jnp.allclose(R, R32, atol=1e-1, rtol=1e-1)
    assert jnp.allclose(z, z32, atol=1e-1, rtol=1e-1)

    # bf16-output path (halves writeback; recommended on v5e) — sanity only.
    R_bf, z_bf = linear_ae_forward(x, prepped, out_dtype=jnp.bfloat16)
    R_bf = jax.block_until_ready(R_bf)
    z_bf = jax.block_until_ready(z_bf)
    assert R_bf.shape == (batch, feature_size) and R_bf.dtype == jnp.bfloat16
    assert z_bf.shape == (batch, latent_size) and z_bf.dtype == jnp.bfloat16
    assert bool(jnp.all(jnp.isfinite(R_bf.astype(jnp.float32))))
    assert bool(jnp.all(jnp.isfinite(z_bf.astype(jnp.float32))))

    print("KERNEL_OK")
</pallas_src>

<mosaic_0001>
module attributes {stable_mosaic.version = 11 : i64} {
  func.func @linear_ae_kernel(%arg0: i32, %arg1: memref<16x128xbf16, #tpu.memory_space<vmem>>, %arg2: memref<128x128xbf16, #tpu.memory_space<vmem>>, %arg3: memref<1x128xf32, #tpu.memory_space<vmem>>, %arg4: memref<128x128xbf16, #tpu.memory_space<vmem>>, %arg5: memref<1x128xf32, #tpu.memory_space<vmem>>, %arg6: memref<128x128xbf16, #tpu.memory_space<vmem>>, %arg7: memref<1x128xf32, #tpu.memory_space<vmem>>, %arg8: memref<128x128xbf16, #tpu.memory_space<vmem>>, %arg9: memref<1x128xf32, #tpu.memory_space<vmem>>, %arg10: memref<16x128xf32, #tpu.memory_space<vmem>>, %arg11: memref<16x128xf32, #tpu.memory_space<vmem>>) attributes {dimension_semantics = [#tpu.dimension_semantics<parallel>], iteration_bounds = array<i64: 1>, scalar_prefetch = 0 : i64, scratch_operands = 0 : i64, tpu.core_type = #tpu.core_type<tc>, window_params = [{transform_indices = @transform_0, window_bounds = array<i64: 16, 128>}, {pipeline_mode = #tpu.pipeline_mode<synchronous>, transform_indices = @transform_1, window_bounds = array<i64: 128, 128>}, {pipeline_mode = #tpu.pipeline_mode<synchronous>, transform_indices = @transform_2, window_bounds = array<i64: 1, 128>}, {pipeline_mode = #tpu.pipeline_mode<synchronous>, transform_indices = @transform_3, window_bounds = array<i64: 128, 128>}, {pipeline_mode = #tpu.pipeline_mode<synchronous>, transform_indices = @transform_4, window_bounds = array<i64: 1, 128>}, {pipeline_mode = #tpu.pipeline_mode<synchronous>, transform_indices = @transform_5, window_bounds = array<i64: 128, 128>}, {pipeline_mode = #tpu.pipeline_mode<synchronous>, transform_indices = @transform_6, window_bounds = array<i64: 1, 128>}, {pipeline_mode = #tpu.pipeline_mode<synchronous>, transform_indices = @transform_7, window_bounds = array<i64: 128, 128>}, {pipeline_mode = #tpu.pipeline_mode<synchronous>, transform_indices = @transform_8, window_bounds = array<i64: 1, 128>}, {transform_indices = @transform_9, window_bounds = array<i64: 16, 128>}, {transform_indices = @transform_10, window_bounds = array<i64: 16, 128>}]} {
    %c0 = arith.constant 0 : index
    %c0_0 = arith.constant 0 : index
    %0 = vector.load %arg1[%c0, %c0_0] : memref<16x128xbf16, #tpu.memory_space<vmem>>, vector<16x128xbf16>
    %c0_1 = arith.constant 0 : index
    %c0_2 = arith.constant 0 : index
    %1 = vector.load %arg2[%c0_1, %c0_2] : memref<128x128xbf16, #tpu.memory_space<vmem>>, vector<128x128xbf16>
    %cst = arith.constant dense<0.000000e+00> : vector<16x128xf32>
    %2 = tpu.matmul %0, %1, %cst {dimension_numbers = #tpu.dot_dimension_numbers<[1], [0], [0], [1], [0, 0, 1, 1], [], []>} : vector<16x128xbf16>, vector<128x128xbf16>, vector<16x128xf32> -> vector<16x128xf32>
    %c0_3 = arith.constant 0 : index
    %c0_4 = arith.constant 0 : index
    %3 = vector.load %arg3[%c0_3, %c0_4] : memref<1x128xf32, #tpu.memory_space<vmem>>, vector<1x128xf32>
    %4 = vector.broadcast %3 : vector<1x128xf32> to vector<16x128xf32>
    %5 = arith.addf %2, %4 : vector<16x128xf32>
    %cst_5 = arith.constant 0.000000e+00 : f32
    %6 = vector.broadcast %cst_5 : f32 to vector<16x128xf32>
    %7 = arith.maximumf %5, %6 : vector<16x128xf32>
    %8 = arith.truncf %7 : vector<16x128xf32> to vector<16x128xbf16>
    %c0_6 = arith.constant 0 : index
    %c0_7 = arith.constant 0 : index
    %9 = vector.load %arg4[%c0_6, %c0_7] : memref<128x128xbf16, #tpu.memory_space<vmem>>, vector<128x128xbf16>
    %cst_8 = arith.constant dense<0.000000e+00> : vector<16x128xf32>
    %10 = tpu.matmul %8, %9, %cst_8 {dimension_numbers = #tpu.dot_dimension_numbers<[1], [0], [0], [1], [0, 0, 1, 1], [], []>} : vector<16x128xbf16>, vector<128x128xbf16>, vector<16x128xf32> -> vector<16x128xf32>
    %c0_9 = arith.constant 0 : index
    %c0_10 = arith.constant 0 : index
    %11 = vector.load %arg5[%c0_9, %c0_10] : memref<1x128xf32, #tpu.memory_space<vmem>>, vector<1x128xf32>
    %12 = vector.broadcast %11 : vector<1x128xf32> to vector<16x128xf32>
    %13 = arith.addf %10, %12 : vector<16x128xf32>
    %14 = arith.truncf %13 : vector<16x128xf32> to vector<16x128xbf16>
    %c0_11 = arith.constant 0 : index
    %c0_12 = arith.constant 0 : index
    %15 = vector.load %arg6[%c0_11, %c0_12] : memref<128x128xbf16, #tpu.memory_space<vmem>>, vector<128x128xbf16>
    %cst_13 = arith.constant dense<0.000000e+00> : vector<16x128xf32>
    %16 = tpu.matmul %14, %15, %cst_13 {dimension_numbers = #tpu.dot_dimension_numbers<[1], [0], [0], [1], [0, 0, 1, 1], [], []>} : vector<16x128xbf16>, vector<128x128xbf16>, vector<16x128xf32> -> vector<16x128xf32>
    %c0_14 = arith.constant 0 : index
    %c0_15 = arith.constant 0 : index
    %17 = vector.load %arg7[%c0_14, %c0_15] : memref<1x128xf32, #tpu.memory_space<vmem>>, vector<1x128xf32>
    %18 = vector.broadcast %17 : vector<1x128xf32> to vector<16x128xf32>
    %19 = arith.addf %16, %18 : vector<16x128xf32>
    %cst_16 = arith.constant 0.000000e+00 : f32
    %20 = vector.broadcast %cst_16 : f32 to vector<16x128xf32>
    %21 = arith.maximumf %19, %20 : vector<16x128xf32>
    %22 = arith.truncf %21 : vector<16x128xf32> to vector<16x128xbf16>
    %c0_17 = arith.constant 0 : index
    %c0_18 = arith.constant 0 : index
    %23 = vector.load %arg8[%c0_17, %c0_18] : memref<128x128xbf16, #tpu.memory_space<vmem>>, vector<128x128xbf16>
    %cst_19 = arith.constant dense<0.000000e+00> : vector<16x128xf32>
    %24 = tpu.matmul %22, %23, %cst_19 {dimension_numbers = #tpu.dot_dimension_numbers<[1], [0], [0], [1], [0, 0, 1, 1], [], []>} : vector<16x128xbf16>, vector<128x128xbf16>, vector<16x128xf32> -> vector<16x128xf32>
    %c0_20 = arith.constant 0 : index
    %c0_21 = arith.constant 0 : index
    %25 = vector.load %arg9[%c0_20, %c0_21] : memref<1x128xf32, #tpu.memory_space<vmem>>, vector<1x128xf32>
    %26 = vector.broadcast %25 : vector<1x128xf32> to vector<16x128xf32>
    %27 = arith.addf %24, %26 : vector<16x128xf32>
    %c0_22 = arith.constant 0 : index
    %c0_23 = arith.constant 0 : index
    %28 = vector.load %arg10[%c0_22, %c0_23] : memref<16x128xf32, #tpu.memory_space<vmem>>, vector<16x128xf32>
    tpu.vector_store %arg10[%c0_22, %c0_23], %27 {strides = array<i32>} : memref<16x128xf32, #tpu.memory_space<vmem>>, vector<16x128xf32>,
    %c0_24 = arith.constant 0 : index
    %c0_25 = arith.constant 0 : index
    %29 = vector.load %arg11[%c0_24, %c0_25] : memref<16x128xf32, #tpu.memory_space<vmem>>, vector<16x128xf32>
    tpu.vector_store %arg11[%c0_24, %c0_25], %13 {strides = array<i32>} : memref<16x128xf32, #tpu.memory_space<vmem>>, vector<16x128xf32>,
    return
  }
  func.func @transform_0(%arg0: i32) -> (i32, i32) {
    %c0_i32 = arith.constant 0 : i32
    %c0_i32_0 = arith.constant 0 : i32
    return %arg0, %c0_i32 : i32, i32
  }
  func.func @transform_1(%arg0: i32) -> (i32, i32) {
    %c0_i32 = arith.constant 0 : i32
    %c0_i32_0 = arith.constant 0 : i32
    %c0_i32_1 = arith.constant 0 : i32
    return %c0_i32, %c0_i32_0 : i32, i32
  }
  func.func @transform_2(%arg0: i32) -> (i32, i32) {
    %c0_i32 = arith.constant 0 : i32
    %c0_i32_0 = arith.constant 0 : i32
    %c0_i32_1 = arith.constant 0 : i32
    return %c0_i32, %c0_i32_0 : i32, i32
  }
  func.func @transform_3(%arg0: i32) -> (i32, i32) {
    %c0_i32 = arith.constant 0 : i32
    %c0_i32_0 = arith.constant 0 : i32
    %c0_i32_1 = arith.constant 0 : i32
    return %c0_i32, %c0_i32_0 : i32, i32
  }
  func.func @transform_4(%arg0: i32) -> (i32, i32) {
    %c0_i32 = arith.constant 0 : i32
    %c0_i32_0 = arith.constant 0 : i32
    %c0_i32_1 = arith.constant 0 : i32
    return %c0_i32, %c0_i32_0 : i32, i32
  }
  func.func @transform_5(%arg0: i32) -> (i32, i32) {
    %c0_i32 = arith.constant 0 : i32
    %c0_i32_0 = arith.constant 0 : i32
    %c0_i32_1 = arith.constant 0 : i32
    return %c0_i32, %c0_i32_0 : i32, i32
  }
  func.func @transform_6(%arg0: i32) -> (i32, i32) {
    %c0_i32 = arith.constant 0 : i32
    %c0_i32_0 = arith.constant 0 : i32
    %c0_i32_1 = arith.constant 0 : i32
    return %c0_i32, %c0_i32_0 : i32, i32
  }
  func.func @transform_7(%arg0: i32) -> (i32, i32) {
    %c0_i32 = arith.constant 0 : i32
    %c0_i32_0 = arith.constant 0 : i32
    %c0_i32_1 = arith.constant 0 : i32
    return %c0_i32, %c0_i32_0 : i32, i32
  }
  func.func @transform_8(%arg0: i32) -> (i32, i32) {
    %c0_i32 = arith.constant 0 : i32
    %c0_i32_0 = arith.constant 0 : i32
    %c0_i32_1 = arith.constant 0 : i32
    return %c0_i32, %c0_i32_0 : i32, i32
  }
  func.func @transform_9(%arg0: i32) -> (i32, i32) {
    %c0_i32 = arith.constant 0 : i32
    %c0_i32_0 = arith.constant 0 : i32
    return %arg0, %c0_i32 : i32, i32
  }
  func.func @transform_10(%arg0: i32) -> (i32, i32) {
    %c0_i32 = arith.constant 0 : i32
    %c0_i32_0 = arith.constant 0 : i32
    return %arg0, %c0_i32 : i32, i32
  }
}

</mosaic_0001>

<bundles_post_ra>
// kernel: tpu_custom_call.1
= control target key start
LH: loop header
LB: loop body
LE: loop exit
PB: predicated region body
PF: predicated region fallthrough
CT: control target
= control target key end

     0   :  { %16 = vsyncpa [#allocation3], 0  ;;  %s1209_s0 = inlined_call_operand.hbm [shape: bf16[16,128], index: 0, kind: input, shape index: {}]   ;;  %s1210_s1 = inlined_call_operand.hbm [shape: bf16[128,128], index: 1, kind: input, shape index: {}]   ;;  %s1211_s2 = inlined_call_operand.vmem [shape: f32[1,128], index: 2, kind: input, shape index: {}]   ;;  %s1212_s3 = inlined_call_operand.hbm [shape: bf16[128,128], index: 3, kind: input, shape index: {}]   ;;  %s1213_s4 = inlined_call_operand.vmem [shape: f32[1,128], index: 4, kind: input, shape index: {}]   ;;  %s1214_s5 = inlined_call_operand.hbm [shape: bf16[128,128], index: 5, kind: input, shape index: {}]   ;;  %s1215_s6 = inlined_call_operand.vmem [shape: f32[1,128], index: 6, kind: input, shape index: {}]   ;;  %s1216_s7 = inlined_call_operand.hbm [shape: bf16[128,128], index: 7, kind: input, shape index: {}]   ;;  %s1217_s8 = inlined_call_operand.vmem [shape: f32[1,128], index: 8, kind: input, shape index: {}]   ;;  %s1218_s9 = inlined_call_operand.hbm [shape: f32[16,128], index: 9, kind: output, shape index: {0}]   ;;  %s1219_s10 = inlined_call_operand.hbm [shape: f32[16,128], index: 10, kind: output, shape index: {1}]  }
   0x1   :  { %17 = vsyncpa [#allocation6], 0 }
   0x2   :  { %18 = vsyncpa [#allocation9], 0 }
   0x3   :  { %19 = vsyncpa [#allocation4], 0 }
   0x4   :  { %20 = vsyncpa [#allocation13], 0  ;;  %s970_s13 = smov [#allocation5]   ;;  %s971_s15 = smov [#allocation8]  }
   0x5   :  { %s38_s14 = sshll.u32 %s970_s13, 4  ;;  %s66_s16 = sshll.u32 %s971_s15, 4  ;;  %s39_s14 = int_to_ptr.vmem [resolvable:$true] %s38_s14  ;;  %s1038_s16 = int_to_ptr.vmem [resolvable:$true] %s66_s16 }
   0x6   :  { %s806_s19 = scalar_lea.hbm %s1210_s1, 1024 }
   0x7   :  { %p807_p0 = scmp.ne.s32.totalorder %s1210_s1, %s806_s19  ;;  %p810_p1 = scmp.lt.u32.totalorder %s806_s19, %s1210_s1 }
   0x9   :  { %p812_p2 = pnand %p810_p1, %p807_p0 }
   0xb   :  { %815 = shalt.err (!%p812_p2)
}
   0xc   :  { %s816_s24 = scalar_lea.vmem %s39_s14, 1024  ;;  %p821_p4 = scmp.lt.s32.totalorder %s39_s14, %s39_s14 }
   0xd   :  { %p817_p3 = scmp.ne.s32.totalorder %s39_s14, %s816_s24  ;;  %p822_p5 = scmp.lt.s32.totalorder %s816_s24, %s816_s24 }
   0xf   :  { %p823_p6 = por %p822_p5, %p821_p4 }
  0x11   :  { %p824_p7 = pnand %p823_p6, %p817_p3 }
  0x13   :  { %827 = shalt.err (!%p824_p7)
}
  0x14   :  { %s972_s25 = smov 64   ;;  %s973_s26 = smov 4  }
  0x15   :  { %44 = dma.hbm_to_vmem [thread:$0]  %s1210_s1, 1024, %s39_s14, [#allocation6], %s972_s25, %s972_s25, %s973_s26  }
  0x16   :  { %s828_s11 = scalar_lea.hbm %s1214_s5, 1024 }
  0x17   :  { %p829_p8 = scmp.ne.s32.totalorder %s1214_s5, %s828_s11  ;;  %p832_p9 = scmp.lt.u32.totalorder %s828_s11, %s1214_s5 }
  0x19   :  { %p834_p10 = pnand %p832_p9, %p829_p8 }
  0x1b   :  { %837 = shalt.err (!%p834_p10)
}
  0x1c   :  { %s838_s18 = scalar_lea.vmem %s1038_s16, 1024  ;;  %p843_p12 = scmp.lt.s32.totalorder %s1038_s16, %s1038_s16 }
  0x1d   :  { %p839_p11 = scmp.ne.s32.totalorder %s1038_s16, %s838_s18  ;;  %p844_p13 = scmp.lt.s32.totalorder %s838_s18, %s838_s18 }
  0x1f   :  { %p845_p0 = por %p844_p13, %p843_p12 }
  0x21   :  { %p846_p1 = pnand %p845_p0, %p839_p11 }
  0x23   :  { %849 = shalt.err (!%p846_p1)
}
  0x24   :  { %72 = dma.hbm_to_vmem [thread:$0]  %s1214_s5, 1024, %s1038_s16, [#allocation9], %s972_s25, %s972_s25, %s973_s26  }
  0x25   :  { %s974_s19 = smov [#allocation2]   ;;  %s975_s21 = smov [#allocation7]  }
  0x26   :  { %s26_s20 = sshll.u32 %s974_s19, 4  ;;  %s52_s22 = sshll.u32 %s975_s21, 4  ;;  %s27_s20 = int_to_ptr.vmem [resolvable:$true] %s26_s20  ;;  %s1075_s22 = int_to_ptr.vmem [resolvable:$true] %s52_s22 }
  0x27   :  { %s850_s27 = scalar_lea.hbm %s1209_s0, 128 }
  0x28   :  { %p851_p2 = scmp.ne.s32.totalorder %s1209_s0, %s850_s27  ;;  %p854_p3 = scmp.lt.u32.totalorder %s850_s27, %s1209_s0 }
  0x2a   :  { %p856_p4 = pnand %p854_p3, %p851_p2 }
  0x2c   :  { %859 = shalt.err (!%p856_p4)
}
  0x2d   :  { %s860_s5 = scalar_lea.vmem %s27_s20, 128  ;;  %p865_p6 = scmp.lt.s32.totalorder %s27_s20, %s27_s20 }
  0x2e   :  { %p861_p5 = scmp.ne.s32.totalorder %s27_s20, %s860_s5  ;;  %p866_p7 = scmp.lt.s32.totalorder %s860_s5, %s860_s5 }
  0x30   :  { %p867_p8 = por %p866_p7, %p865_p6 }
  0x32   :  { %p868_p9 = pnand %p867_p8, %p861_p5 }
  0x34   :  { %871 = shalt.err (!%p868_p9)
}
  0x35   :  { %32 = dma.hbm_to_vmem [thread:$0]  %s1209_s0, 128, %s27_s20, [#allocation3], %s972_s25, %s972_s25, %s973_s26  }
  0x36   :  { %s872_s17 = scalar_lea.hbm %s1212_s3, 1024 }
  0x37   :  { %p873_p10 = scmp.ne.s32.totalorder %s1212_s3, %s872_s17  ;;  %p876_p11 = scmp.lt.u32.totalorder %s872_s17, %s1212_s3 }
  0x39   :  { %p878_p12 = pnand %p876_p11, %p873_p10 }
  0x3b   :  { %881 = shalt.err (!%p878_p12)
}
  0x3c   :  { %s882_s21 = scalar_lea.vmem %s1075_s22, 1024  ;;  %p887_p0 = scmp.lt.s32.totalorder %s1075_s22, %s1075_s22 }
  0x3d   :  { %p883_p13 = scmp.ne.s32.totalorder %s1075_s22, %s882_s21  ;;  %p888_p1 = scmp.lt.s32.totalorder %s882_s21, %s882_s21 }
  0x3f   :  { %p889_p2 = por %p888_p1, %p887_p0 }
  0x41   :  { %p890_p3 = pnand %p889_p2, %p883_p13 }
  0x43   :  { %893 = shalt.err (!%p890_p3)
}
  0x44   :  { %58 = dma.hbm_to_vmem [thread:$0]  %s1212_s3, 1024, %s1075_s22, [#allocation6], %s972_s25, %s972_s25, %s973_s26  }
  0x45   :  { %s976_s23 = smov [#allocation10]   ;;  %s894_s29 = scalar_lea.hbm %s1216_s7, 1024 }
  0x46   :  { %s80_s24 = sshll.u32 %s976_s23, 4  ;;  %p895_p4 = scmp.ne.s32.totalorder %s1216_s7, %s894_s29  ;;  %s81_s24 = int_to_ptr.vmem [resolvable:$true] %s80_s24 }
  0x47   :  { %p898_p5 = scmp.lt.u32.totalorder %s894_s29, %s1216_s7 }
  0x49   :  { %p900_p6 = pnand %p898_p5, %p895_p4 }
  0x4b   :  { %903 = shalt.err (!%p900_p6)
}
  0x4c   :  { %s904_s12 = scalar_lea.vmem %s81_s24, 1024  ;;  %p909_p8 = scmp.lt.s32.totalorder %s81_s24, %s81_s24 }
  0x4d   :  { %p905_p7 = scmp.ne.s32.totalorder %s81_s24, %s904_s12  ;;  %p910_p9 = scmp.lt.s32.totalorder %s904_s12, %s904_s12 }
  0x4f   :  { %p911_p10 = por %p910_p9, %p909_p8 }
  0x51   :  { %p912_p11 = pnand %p911_p10, %p905_p7 }
  0x53   :  { %915 = shalt.err (!%p912_p11)
}
  0x54   :  { %86 = dma.hbm_to_vmem [thread:$0]  %s1216_s7, 1024, %s81_s24, [#allocation9], %s972_s25, %s972_s25, %s973_s26  }
  0x55   :  { %960 = dma.done.wait [#allocation3], 128  }
  0x56   :  { %961 = vsyncadd [#allocation3], 4294967168 }
  0x57   :  { %962 = dma.done.wait [#allocation6], 2048  }
  0x58   :  { %963 = vsyncadd [#allocation6], 4294965248 }
  0x59   :  { %964 = dma.done.wait [#allocation9], 2048  }
  0x5a   :  { %965 = vsyncadd [#allocation9], 4294965248  ;;  %v977_v0 = vmov 0.0   ;;  %vm978_vm0 = vmmov 0   ;;  %v773_v1 = vld [vmem:[#allocation5] sm:$0xff]   ;;  %v774_v2 = vld [vmem:[#allocation5 + $0x8] sm:$0xff]  }
  0x5b   :  { %680 = vmatprep.subr.bf16.mxu0 %v977_v0  ;;  %696 = vmatprep.mubr.msk.bf16.mxu0 %vm978_vm0, %v977_v0  ;;  %v775_v3 = vld [vmem:[#allocation5 + $0x10] sm:$0xff]   ;;  %v782_v4 = vld [vmem:[#allocation7] sm:$0xff]   ;;  %v776_v5 = vld [vmem:[#allocation5 + $0x18] sm:$0xff]  }
  0x5c   :  { %700 = vmatprep.subr.bf16.mxu1 %v977_v0  ;;  %716 = vmatprep.mubr.msk.bf16.mxu1 %vm978_vm0, %v977_v0  ;;  %v783_v6 = vld [vmem:[#allocation7 + $0x8] sm:$0xff]   ;;  %v777_v7 = vld [vmem:[#allocation5 + $0x20] sm:$0xff]   ;;  %v784_v8 = vld [vmem:[#allocation7 + $0x10] sm:$0xff]  }
  0x5d   :  { %681 = vmatpush3.bf16.msra.mxu0 %v773_v1  ;;  %701 = vmatpush3.bf16.msra.mxu1 %v782_v4  ;;  %v778_v9 = vld [vmem:[#allocation5 + $0x28] sm:$0xff]   ;;  %v785_v10 = vld [vmem:[#allocation7 + $0x18] sm:$0xff]   ;;  %v779_v11 = vld [vmem:[#allocation5 + $0x30] sm:$0xff]  }
  0x5e   :  { %682 = vmatprep.subr.bf16.mxu0 %v977_v0  ;;  %702 = vmatprep.subr.bf16.mxu1 %v977_v0  ;;  %v786_v12 = vld [vmem:[#allocation7 + $0x20] sm:$0xff]   ;;  %v780_v13 = vld [vmem:[#allocation5 + $0x38] sm:$0xff]   ;;  %v787_v14 = vld [vmem:[#allocation7 + $0x28] sm:$0xff]  }
  0x5f   :  { %v781_v15 = vld [vmem:[#allocation2] sm:$0xff]   ;;  %v788_v16 = vld [vmem:[#allocation7 + $0x30] sm:$0xff]   ;;  %v790_v18 = vld [vmem:[#allocation8] sm:$0xff]  }
  0x60   :  { %v789_v17 = vld [vmem:[#allocation7 + $0x38] sm:$0xff]   ;;  %v791_v19 = vld [vmem:[#allocation8 + $0x8] sm:$0xff]   ;;  %v792_v20 = vld [vmem:[#allocation8 + $0x10] sm:$0xff]  }
  0x61   :  { %683 = vmatpush3.bf16.msra.mxu0 %v774_v2  ;;  %703 = vmatpush3.bf16.msra.mxu1 %v783_v6  ;;  %v793_v21 = vld [vmem:[#allocation8 + $0x18] sm:$0xff]   ;;  %v794_v22 = vld [vmem:[#allocation8 + $0x20] sm:$0xff]   ;;  %v795_v23 = vld [vmem:[#allocation8 + $0x28] sm:$0xff]  }
  0x62   :  { %684 = vmatprep.subr.bf16.mxu0 %v977_v0  ;;  %704 = vmatprep.subr.bf16.mxu1 %v977_v0  ;;  %v607_v24 = vld [vmem:[%s1211_s2] ss:$0 sm:$0xff]  ;;  %v796_v34 = vld [vmem:[#allocation8 + $0x30] sm:$0xff]   ;;  %v798_v36 = vld [vmem:[#allocation10] sm:$0xff]  }
  0x63   :  { %v797_v35 = vld [vmem:[#allocation8 + $0x38] sm:$0xff]   ;;  %v799_v37 = vld [vmem:[#allocation10 + $0x8] sm:$0xff]   ;;  %v800_v38 = vld [vmem:[#allocation10 + $0x10] sm:$0xff]  }
  0x64   :  { %v801_v39 = vld [vmem:[#allocation10 + $0x18] sm:$0xff]   ;;  %v802_v40 = vld [vmem:[#allocation10 + $0x20] sm:$0xff]   ;;  %v803_v41 = vld [vmem:[#allocation10 + $0x28] sm:$0xff]  }
  0x65   :  { %685 = vmatpush3.bf16.msra.mxu0 %v775_v3  ;;  %705 = vmatpush3.bf16.msra.mxu1 %v784_v8  ;;  %v617_v42 = vld [vmem:[%s1213_s4] ss:$0 sm:$0xff]  ;;  %v804_v50 = vld [vmem:[#allocation10 + $0x30] sm:$0xff]   ;;  %s979_s4 = smov [#allocation12]  }
  0x66   :  { %686 = vmatprep.subr.bf16.mxu0 %v977_v0  ;;  %706 = vmatprep.subr.bf16.mxu1 %v977_v0  ;;  %v805_v51 = vld [vmem:[#allocation10 + $0x38] sm:$0xff]   ;;  %s589_s17 = sshll.u32 %s979_s4, 4  ;;  %s590_s17 = int_to_ptr.vmem [resolvable:$true] %s589_s17 }
  0x67   :  { %v626_v52 = vld [vmem:[%s1215_s6] ss:$0 sm:$0xff]  ;;  %s916_s18 = scalar_lea.vmem %s590_s17, 256  ;;  %p921_p13 = scmp.lt.s32.totalorder %s590_s17, %s590_s17 }
  0x68   :  { %p917_p12 = scmp.ne.s32.totalorder %s590_s17, %s916_s18  ;;  %p922_p0 = scmp.lt.s32.totalorder %s916_s18, %s916_s18 }
  0x69   :  { %687 = vmatpush3.bf16.msra.mxu0 %v776_v5  ;;  %707 = vmatpush3.bf16.msra.mxu1 %v785_v10 }
  0x6a   :  { %688 = vmatprep.subr.bf16.mxu0 %v977_v0  ;;  %708 = vmatprep.subr.bf16.mxu1 %v977_v0  ;;  %p923_p1 = por %p922_p0, %p921_p13 }
  0x6c   :  { %p924_p2 = pnand %p923_p1, %p917_p12 }
  0x6d   :  { %689 = vmatpush3.bf16.msra.mxu0 %v777_v7  ;;  %709 = vmatpush3.bf16.msra.mxu1 %v786_v12 }
  0x6e   :  { %690 = vmatprep.subr.bf16.mxu0 %v977_v0  ;;  %710 = vmatprep.subr.bf16.mxu1 %v977_v0 }
  0x71   :  { %691 = vmatpush3.bf16.msra.mxu0 %v778_v9  ;;  %711 = vmatpush3.bf16.msra.mxu1 %v787_v14 }
  0x72   :  { %692 = vmatprep.subr.bf16.mxu0 %v977_v0  ;;  %712 = vmatprep.subr.bf16.mxu1 %v977_v0 }
  0x75   :  { %693 = vmatpush3.bf16.msra.mxu0 %v779_v11  ;;  %713 = vmatpush3.bf16.msra.mxu1 %v788_v16 }
  0x76   :  { %694 = vmatprep.subr.bf16.mxu0 %v977_v0  ;;  %714 = vmatprep.subr.bf16.mxu1 %v977_v0 }
  0x79   :  { %695 = vmatpush3.bf16.msra.mxu0 %v780_v13  ;;  %715 = vmatpush3.bf16.msra.mxu1 %v789_v17 }
  0x7a   :  { %720 = vmatprep.subr.bf16.mxu0 %v977_v0  ;;  %740 = vmatprep.subr.bf16.mxu1 %v977_v0 }
  0x7c   :  { %697 = vmatmul.mubr.bf16.vlgmr.msra.gmra.mrb[0].mxu0 %v781_v15 }
  0x7d   :  { %736 = vmatprep.mubr.msk.bf16.mxu0 %vm978_vm0, %v977_v0  ;;  %721 = vmatpush3.bf16.msra.mxu0 %v790_v18 }
  0x7e   :  { %722 = vmatprep.subr.bf16.mxu0 %v977_v0 }
  0x81   :  { %723 = vmatpush3.bf16.msra.mxu0 %v791_v19 }
  0x82   :  { %724 = vmatprep.subr.bf16.mxu0 %v977_v0 }
  0x85   :  { %725 = vmatpush3.bf16.msra.mxu0 %v792_v20 }
  0x86   :  { %726 = vmatprep.subr.bf16.mxu0 %v977_v0 }
  0x89   :  { %727 = vmatpush3.bf16.msra.mxu0 %v793_v21 }
  0x8a   :  { %728 = vmatprep.subr.bf16.mxu0 %v977_v0 }
  0x8d   :  { %729 = vmatpush3.bf16.msra.mxu0 %v794_v22 }
  0x8e   :  { %730 = vmatprep.subr.bf16.mxu0 %v977_v0 }
  0x91   :  { %731 = vmatpush3.bf16.msra.mxu0 %v795_v23 }
  0x92   :  { %732 = vmatprep.subr.bf16.mxu0 %v977_v0 }
  0x95   :  { %733 = vmatpush3.bf16.msra.mxu0 %v796_v34 }
  0x96   :  { %734 = vmatprep.subr.bf16.mxu0 %v977_v0 }
  0x99   :  { %735 = vmatpush3.bf16.msra.mxu0 %v797_v35 }
 0x14f   :  { %v218_v25 = vpop.f32.mrb[0].mxu0 }
 0x150   :  { %v219_v26 = vadd.f32 %v607_v24, %v218_v25  ;;  %v698_v27 = vpop.f32.mrb[1].mxu0 }
 0x151   :  { %v221_v28 = vpop.f32.mrb[2].mxu0 }
 0x152   :  { %v222_v29 = vadd.f32 %v607_v24, %v221_v28  ;;  %v699_v30 = vpop.f32.mrb[3].mxu0  ;;  %v225_v31 = vmax.f32 %v219_v26, 0.0 }
 0x154   :  { %v226_v32 = vmax.f32 %v222_v29, 0.0 }
 0x156   :  { %v227_v33 = vpack.c.bf16 %v226_v32, %v225_v31 }
 0x158   :  { %717 = vmatmul.mubr.bf16.vlgmr.msra.gmra.mrb[0].mxu1 %v227_v33 }
 0x159   :  { %756 = vmatprep.mubr.msk.bf16.mxu1 %vm978_vm0, %v977_v0  ;;  %741 = vmatpush3.bf16.msra.mxu1 %v798_v36 }
 0x15a   :  { %742 = vmatprep.subr.bf16.mxu1 %v977_v0 }
 0x15d   :  { %743 = vmatpush3.bf16.msra.mxu1 %v799_v37 }
 0x15e   :  { %744 = vmatprep.subr.bf16.mxu1 %v977_v0 }
 0x161   :  { %745 = vmatpush3.bf16.msra.mxu1 %v800_v38 }
 0x162   :  { %746 = vmatprep.subr.bf16.mxu1 %v977_v0 }
 0x165   :  { %747 = vmatpush3.bf16.msra.mxu1 %v801_v39 }
 0x166   :  { %748 = vmatprep.subr.bf16.mxu1 %v977_v0 }
 0x169   :  { %749 = vmatpush3.bf16.msra.mxu1 %v802_v40 }
 0x16a   :  { %750 = vmatprep.subr.bf16.mxu1 %v977_v0 }
 0x16d   :  { %751 = vmatpush3.bf16.msra.mxu1 %v803_v41 }
 0x16e   :  { %752 = vmatprep.subr.bf16.mxu1 %v977_v0 }
 0x171   :  { %753 = vmatpush3.bf16.msra.mxu1 %v804_v50 }
 0x172   :  { %754 = vmatprep.subr.bf16.mxu1 %v977_v0 }
 0x175   :  { %755 = vmatpush3.bf16.msra.mxu1 %v805_v51 }
 0x22b   :  { %v333_v43 = vpop.f32.mrb[0].mxu1 }
 0x22c   :  { %v334_v44 = vadd.f32 %v617_v42, %v333_v43  ;;  %v718_v45 = vpop.f32.mrb[1].mxu1 }
 0x22d   :  { %v336_v46 = vpop.f32.mrb[2].mxu1 }
 0x22e   :  { %570 = vst [vmem:[#allocation12] sm:$0xff] %v334_v44  ;;  %v337_v47 = vadd.f32 %v617_v42, %v336_v46  ;;  %v719_v48 = vpop.f32.mrb[3].mxu1 }
 0x230   :  { %v340_v49 = vpack.c.bf16 %v337_v47, %v334_v44  ;;  %571 = vst [vmem:[#allocation12 + $0x8] sm:$0xff] %v337_v47 }
 0x232   :  { %737 = vmatmul.mubr.bf16.vlgmr.msra.gmra.mrb[4].mxu0 %v340_v49 }
 0x305   :  { %v446_v53 = vpop.f32.mrb[4].mxu0 }
 0x306   :  { %v447_v54 = vadd.f32 %v626_v52, %v446_v53  ;;  %v738_v55 = vpop.f32.mrb[5].mxu0 }
 0x307   :  { %v449_v56 = vpop.f32.mrb[6].mxu0 }
 0x308   :  { %v450_v57 = vadd.f32 %v626_v52, %v449_v56  ;;  %v739_v58 = vpop.f32.mrb[7].mxu0  ;;  %v453_v59 = vmax.f32 %v447_v54, 0.0 }
 0x30a   :  { %v454_v60 = vmax.f32 %v450_v57, 0.0 }
 0x30c   :  { %v455_v61 = vpack.c.bf16 %v454_v60, %v453_v59 }
 0x30e   :  { %757 = vmatmul.mubr.bf16.vlgmr.msra.gmra.mrb[4].mxu1 %v455_v61 }
 0x30f   :  { %927 = shalt.err (!%p924_p2)
}
 0x310   :  { %s928_s14 = scalar_lea.hbm %s1219_s10, 256 }
 0x311   :  { %p929_p3 = scmp.ne.s32.totalorder %s1219_s10, %s928_s14  ;;  %p932_p4 = scmp.lt.u32.totalorder %s928_s14, %s1219_s10 }
 0x313   :  { %p934_p5 = pnand %p932_p4, %p929_p3 }
 0x315   :  { %937 = shalt.err (!%p934_p5)
}
 0x316   :  { %s980_s23 = smov 128   ;;  %s981_s24 = smov 8   ;;  %v635_v62 = vld [vmem:[%s1217_s8] ss:$0 sm:$0xff] }
 0x317   :  { %595 = dma.vmem_to_hbm [thread:$0]  %s590_s17, 256, %s1219_s10, [#allocation13], %s980_s23, %s980_s23, %s981_s24  }
 0x318   :  { %s982_s11 = smov [#allocation11]  }
 0x319   :  { %s577_s5 = sshll.u32 %s982_s11, 4  ;;  %s578_s5 = int_to_ptr.vmem [resolvable:$true] %s577_s5 }
 0x31a   :  { %s938_s16 = scalar_lea.vmem %s578_s5, 256  ;;  %p943_p7 = scmp.lt.s32.totalorder %s578_s5, %s578_s5 }
 0x31b   :  { %p939_p6 = scmp.ne.s32.totalorder %s578_s5, %s938_s16  ;;  %p944_p8 = scmp.lt.s32.totalorder %s938_s16, %s938_s16 }
 0x31d   :  { %p945_p9 = por %p944_p8, %p943_p7 }
 0x31f   :  { %p946_p10 = pnand %p945_p9, %p939_p6 }
 0x3e1   :  { %v561_v63 = vpop.f32.mrb[4].mxu1 }
 0x3e2   :  { %v562_v0 = vadd.f32 %v635_v62, %v561_v63  ;;  %v758_v1 = vpop.f32.mrb[5].mxu1 }
 0x3e3   :  { %v564_v2 = vpop.f32.mrb[6].mxu1 }
 0x3e4   :  { %568 = vst [vmem:[#allocation11] sm:$0xff] %v562_v0  ;;  %v565_v3 = vadd.f32 %v635_v62, %v564_v2  ;;  %v759_v4 = vpop.f32.mrb[7].mxu1 }
 0x3e6   :  { %569 = vst [vmem:[#allocation11 + $0x8] sm:$0xff] %v565_v3 }
 0x3e7   :  { %949 = shalt.err (!%p946_p10)
}
 0x3e8   :  { %s950_s12 = scalar_lea.hbm %s1218_s9, 256 }
 0x3e9   :  { %p951_p11 = scmp.ne.s32.totalorder %s1218_s9, %s950_s12  ;;  %p954_p12 = scmp.lt.u32.totalorder %s950_s12, %s1218_s9 }
 0x3eb   :  { %p956_p13 = pnand %p954_p12, %p951_p11 }
 0x3ed   :  { %959 = shalt.err (!%p956_p13)
}
 0x3ee   :  { %583 = dma.vmem_to_hbm [thread:$0]  %s578_s5, 256, %s1218_s9, [#allocation4], %s980_s23, %s980_s23, %s981_s24  }
 0x3ef   :  { %966 = dma.done.wait [#allocation4], 256  }
 0x3f0   :  { %967 = vsyncadd [#allocation4], 4294967040 }
 0x3f1   :  { %968 = dma.done.wait [#allocation13], 256  }
 0x3f2   :  { %969 = vsyncadd [#allocation13], 4294967040 }
 0x3f3   :  { %602 = vsyncpa [#allocation3], 1 }
 0x3f4   :  { %603 = vsyncpa [#allocation6], 1 }
 0x3f5   :  { %604 = vsyncpa [#allocation9], 1 }
 0x3f6   :  { %605 = vsyncpa [#allocation4], 1 }
 0x3f7   :  { %606 = vsyncpa [#allocation13], 1 }

</bundles_post_ra>
